<compile_context>
chip_gen: v7x
topology: tpu7x:2x2x1
jax: 0.10.0
libtpu: 0.0.40
codegen_flags: <defaults>
</compile_context>

<pallas_src>
import functools

import jax
import jax.numpy as jnp
from jax.experimental import pallas as pl
from jax.experimental.pallas import tpu as pltpu

EPS = 1e-5                     # norm_epsilon
DEFAULT_TILE = 256             # token-tile rows; sweep 128/256/512 at scale
VMEM_LIMIT = 48 * 1024 * 1024  # raised scoped-VMEM budget


def _round_up(n, m):
    return ((n + m - 1) // m) * m


def _layernorm(x, gamma, beta):
    mean = jnp.mean(x, axis=-1, keepdims=True)
    c = x - mean
    var = jnp.mean(c * c, axis=-1, keepdims=True)
    inv = jax.lax.rsqrt(var + EPS)
    return c * inv * gamma + beta


def _gated_mixer(normed, wx, bx, wz, bz, wout, bout):
    """Stand-in mixer: two lane-aligned bf16 matmuls + SiLU gate + out_proj,
    all accumulated in fp32 on the MXU."""
    nb = normed.astype(jnp.bfloat16)
    xp = jnp.dot(nb, wx, preferred_element_type=jnp.float32) + bx
    zp = jnp.dot(nb, wz, preferred_element_type=jnp.float32) + bz
    y = xp * (zp * jax.nn.sigmoid(zp))          # x * SiLU(z)
    return jnp.dot(y.astype(jnp.bfloat16), wout,
                   preferred_element_type=jnp.float32) + bout


# --------------------------------------------------------------------------
# Kernel 1: fused stack of Blocks.
# Grid = (token_tiles [parallel], num_layers [arbitrary]).
# The two outputs (hidden, residual) use a token-only index map, so they stay
# resident in VMEM across the layer axis and act as the per-tile state.
# --------------------------------------------------------------------------
def stack_kernel(x_ref, gamma_ref, beta_ref, wx_ref, bx_ref, wz_ref, bz_ref,
                 wout_ref, bout_ref, h_ref, res_ref):
    layer = pl.program_id(1)

    @pl.when(layer == 0)
    def _():
        # residual is None for the first Block -> residual = hidden_states.
        res_ref[...] = x_ref[...]

    @pl.when(layer > 0)
    def _():
        # residual = residual + hidden_states   (DropPath = identity in eval)
        res_ref[...] = res_ref[...] + h_ref[...]

    normed = _layernorm(res_ref[...], gamma_ref[...], beta_ref[...])
    h_ref[...] = _gated_mixer(normed, wx_ref[...], bx_ref[...],
                              wz_ref[...], bz_ref[...],
                              wout_ref[...], bout_ref[...])


# --------------------------------------------------------------------------
# Kernel 2: fused norm_f + finalBlock (add + LN + add + LN + final mixer).
# --------------------------------------------------------------------------
def tail_kernel(h_ref, res_ref, gf_ref, bf_ref, gfin_ref, bfin_ref,
                wx_ref, bx_ref, wz_ref, bz_ref, wout_ref, bout_ref, out_ref):
    # norm_f: residual = residual + hidden ; hidden = LN_f(residual)
    res1 = res_ref[...] + h_ref[...]
    h1 = _layernorm(res1, gf_ref[...], bf_ref[...])
    # finalBlock: residual = residual + hidden ; hidden = LN(residual) ; mixer
    res2 = res1 + h1
    h2 = _layernorm(res2, gfin_ref[...], bfin_ref[...])
    out_ref[...] = _gated_mixer(h2, wx_ref[...], bx_ref[...],
                                wz_ref[...], bz_ref[...],
                                wout_ref[...], bout_ref[...])


# --------------------------------------------------------------------------
# Wrappers
# --------------------------------------------------------------------------
def fused_stack(h, stack_params, tile):
    Npad, D = h.shape
    gam, bet, wx, bx, wz, bz, wout, bout = stack_params
    n_layers = gam.shape[0]
    d_inner = wx.shape[-1]

    tok = lambda i, l: (i, 0)
    per_layer = lambda i, l: (l, 0, 0)

    return pl.pallas_call(
        stack_kernel,
        out_shape=(jax.ShapeDtypeStruct((Npad, D), jnp.float32),   # hidden
                   jax.ShapeDtypeStruct((Npad, D), jnp.float32)),  # residual
        grid=(Npad // tile, n_layers),
        in_specs=[
            pl.BlockSpec((tile, D), tok),                   # x
            pl.BlockSpec((None, 1, D), per_layer),          # gamma
            pl.BlockSpec((None, 1, D), per_layer),          # beta
            pl.BlockSpec((None, D, d_inner), per_layer),    # w_x (bf16)
            pl.BlockSpec((None, 1, d_inner), per_layer),    # b_x
            pl.BlockSpec((None, D, d_inner), per_layer),    # w_z (bf16)
            pl.BlockSpec((None, 1, d_inner), per_layer),    # b_z
            pl.BlockSpec((None, d_inner, D), per_layer),    # w_out (bf16)
            pl.BlockSpec((None, 1, D), per_layer),          # b_out
        ],
        out_specs=(pl.BlockSpec((tile, D), tok),
                   pl.BlockSpec((tile, D), tok)),
        compiler_params=pltpu.CompilerParams(
            dimension_semantics=("parallel", "arbitrary"),
            vmem_limit_bytes=VMEM_LIMIT),
    )(h, gam, bet, wx, bx, wz, bz, wout, bout)


def fused_tail(h, res, tail_params, tile):
    Npad, D = h.shape
    gf, bf, gfin, bfin, wx, bx, wz, bz, wout, bout = tail_params
    d_inner = wx.shape[-1]
    Dout = wout.shape[-1]

    tok = lambda i: (i, 0)
    full = lambda i: (0, 0)

    return pl.pallas_call(
        tail_kernel,
        out_shape=jax.ShapeDtypeStruct((Npad, Dout), jnp.float32),
        grid=(Npad // tile,),
        in_specs=[
            pl.BlockSpec((tile, D), tok),          # hidden
            pl.BlockSpec((tile, D), tok),          # residual
            pl.BlockSpec((1, D), full),            # norm_f gamma
            pl.BlockSpec((1, D), full),            # norm_f beta
            pl.BlockSpec((1, D), full),            # final LN gamma
            pl.BlockSpec((1, D), full),            # final LN beta
            pl.BlockSpec((D, d_inner), full),      # w_x  (bf16)
            pl.BlockSpec((1, d_inner), full),      # b_x
            pl.BlockSpec((D, d_inner), full),      # w_z  (bf16)
            pl.BlockSpec((1, d_inner), full),      # b_z
            pl.BlockSpec((d_inner, Dout), full),   # w_out (bf16)
            pl.BlockSpec((1, Dout), full),         # b_out
        ],
        out_specs=pl.BlockSpec((tile, Dout), tok),
        compiler_params=pltpu.CompilerParams(
            dimension_semantics=("parallel",),
            vmem_limit_bytes=VMEM_LIMIT),
    )(h, res, gf, bf, gfin, bfin, wx, bx, wz, bz, wout, bout)


# --------------------------------------------------------------------------
# Parameter construction (deterministic).  Mixer weights kept in bf16; LN
# params, biases and the residual stream stay fp32.
# --------------------------------------------------------------------------
def init_params(key, num_blocks, d_model, d_model_out, d_state, modes):
    del d_state, modes      # carried by the API, unused by the stand-in mixer
    d_inner = 2 * d_model
    n_layers = num_blocks - 1

    def mixer_weights(k, d_out):
        k1, k2, k3 = jax.random.split(k, 3)
        wx = (0.02 * jax.random.normal(k1, (d_model, d_inner), jnp.float32)
              ).astype(jnp.bfloat16)
        wz = (0.02 * jax.random.normal(k2, (d_model, d_inner), jnp.float32)
              ).astype(jnp.bfloat16)
        wout = (0.02 * jax.random.normal(k3, (d_inner, d_out), jnp.float32)
                ).astype(jnp.bfloat16)
        bx = jnp.zeros((1, d_inner), jnp.float32)
        bz = jnp.zeros((1, d_inner), jnp.float32)
        bout = jnp.zeros((1, d_out), jnp.float32)
        return wx, bx, wz, bz, wout, bout

    keys = jax.random.split(key, max(n_layers, 1) + 1)

    stack = None
    if n_layers > 0:
        gam = jnp.ones((n_layers, 1, d_model), jnp.float32)   # LayerNorm init
        bet = jnp.zeros((n_layers, 1, d_model), jnp.float32)
        wx_l, bx_l, wz_l, bz_l, wo_l, bo_l = [], [], [], [], [], []
        for i in range(n_layers):
            wx, bx, wz, bz, wo, bo = mixer_weights(keys[i], d_model)
            wx_l.append(wx); bx_l.append(bx)
            wz_l.append(wz); bz_l.append(bz)
            wo_l.append(wo); bo_l.append(bo)
        stack = (gam, bet,
                 jnp.stack(wx_l), jnp.stack(bx_l),
                 jnp.stack(wz_l), jnp.stack(bz_l),
                 jnp.stack(wo_l), jnp.stack(bo_l))

    gf = jnp.ones((1, d_model), jnp.float32)
    bf = jnp.zeros((1, d_model), jnp.float32)
    gfin = jnp.ones((1, d_model), jnp.float32)
    bfin = jnp.zeros((1, d_model), jnp.float32)
    wx_f, bx_f, wz_f, bz_f, wo_f, bo_f = mixer_weights(keys[-1], d_model_out)
    tail = (gf, bf, gfin, bfin, wx_f, bx_f, wz_f, bz_f, wo_f, bo_f)

    return {"stack": stack, "tail": tail}


# --------------------------------------------------------------------------
# Full forward
# --------------------------------------------------------------------------
def mamba_pod_time_forward(x, params, tile=DEFAULT_TILE):
    B, L, D = x.shape
    N = B * L
    h = x.reshape(N, D).astype(jnp.float32)

    # Pick the largest tile <= DEFAULT_TILE (multiple of 8) and pad N so no
    # tokens are dropped.  Padded rows are garbage-but-finite and sliced off.
    tile = min(tile, _round_up(N, 8))
    Npad = _round_up(N, tile)
    if Npad != N:
        h = jnp.pad(h, ((0, Npad - N), (0, 0)))

    if params["stack"] is not None:
        h, res = fused_stack(h, params["stack"], tile)
    else:
        # no regular layers: residual is None -> residual = hidden at norm_f,
        # which the tail kernel reproduces with a zero residual input.
        res = jnp.zeros_like(h)

    out = fused_tail(h, res, params["tail"], tile)
    return out[:N].reshape(B, L, -1)


if __name__ == "__main__":
    # Small, forward-consistent shapes
    B, L = 2, 8
    d_model = 32
    d_model_out = 16
    d_state = 16
    modes = 4
    num_blocks = 3   # 2 regular Blocks + 1 finalBlock

    key = jax.random.PRNGKey(0)
    k_x, k_p = jax.random.split(key)
    x = jax.random.normal(k_x, (B, L, d_model), jnp.float32)
    params = init_params(k_p, num_blocks, d_model, d_model_out, d_state, modes)

    fwd = jax.jit(functools.partial(mamba_pod_time_forward, params=params))
    out = fwd(x)
    jax.block_until_ready(out)
    assert out.shape == (B, L, d_model_out)
    assert jnp.all(jnp.isfinite(out))
    print("KERNEL_OK")
</pallas_src>

<mosaic_0001>
module attributes {stable_mosaic.version = 11 : i64} {
  func.func @stack_kernel(%arg0: i32, %arg1: i32, %arg2: memref<16x32xf32, #tpu.memory_space<vmem>>, %arg3: memref<1x1x32xf32, #tpu.memory_space<vmem>>, %arg4: memref<1x1x32xf32, #tpu.memory_space<vmem>>, %arg5: memref<1x32x64xbf16, #tpu.memory_space<vmem>>, %arg6: memref<1x1x64xf32, #tpu.memory_space<vmem>>, %arg7: memref<1x32x64xbf16, #tpu.memory_space<vmem>>, %arg8: memref<1x1x64xf32, #tpu.memory_space<vmem>>, %arg9: memref<1x64x32xbf16, #tpu.memory_space<vmem>>, %arg10: memref<1x1x32xf32, #tpu.memory_space<vmem>>, %arg11: memref<16x32xf32, #tpu.memory_space<vmem>>, %arg12: memref<16x32xf32, #tpu.memory_space<vmem>>) attributes {dimension_semantics = [#tpu.dimension_semantics<parallel>, #tpu.dimension_semantics<arbitrary>], iteration_bounds = array<i64: 1, 2>, scalar_prefetch = 0 : i64, scratch_operands = 0 : i64, tpu.core_type = #tpu.core_type<tc>, window_params = [{transform_indices = @transform_0, window_bounds = array<i64: 16, 32>}, {transform_indices = @transform_1, window_bounds = array<i64: 1, 1, 32>}, {transform_indices = @transform_2, window_bounds = array<i64: 1, 1, 32>}, {transform_indices = @transform_3, window_bounds = array<i64: 1, 32, 64>}, {transform_indices = @transform_4, window_bounds = array<i64: 1, 1, 64>}, {transform_indices = @transform_5, window_bounds = array<i64: 1, 32, 64>}, {transform_indices = @transform_6, window_bounds = array<i64: 1, 1, 64>}, {transform_indices = @transform_7, window_bounds = array<i64: 1, 64, 32>}, {transform_indices = @transform_8, window_bounds = array<i64: 1, 1, 32>}, {transform_indices = @transform_9, window_bounds = array<i64: 16, 32>}, {transform_indices = @transform_10, window_bounds = array<i64: 16, 32>}]} {
    %c0_i32 = arith.constant 0 : i32
    %0 = arith.cmpi eq, %arg1, %c0_i32 : i32
    %1 = arith.extui %0 : i1 to i32
    %c0_i32_0 = arith.constant 0 : i32
    %2 = arith.cmpi ne, %1, %c0_i32_0 : i32
    scf.if %2 {
      %c0_38 = arith.constant 0 : index
      %c0_39 = arith.constant 0 : index
      %62 = vector.load %arg2[%c0_38, %c0_39] : memref<16x32xf32, #tpu.memory_space<vmem>>, vector<16x32xf32>
      %c0_40 = arith.constant 0 : index
      %c0_41 = arith.constant 0 : index
      %63 = vector.load %arg12[%c0_40, %c0_41] : memref<16x32xf32, #tpu.memory_space<vmem>>, vector<16x32xf32>
      tpu.vector_store %arg12[%c0_40, %c0_41], %62 {strides = array<i32>} : memref<16x32xf32, #tpu.memory_space<vmem>>, vector<16x32xf32>,
    } else {
    }
    %c0_i32_1 = arith.constant 0 : i32
    %3 = arith.cmpi sgt, %arg1, %c0_i32_1 : i32
    %4 = arith.extui %3 : i1 to i32
    %c0_i32_2 = arith.constant 0 : i32
    %5 = arith.cmpi ne, %4, %c0_i32_2 : i32
    scf.if %5 {
      %c0_38 = arith.constant 0 : index
      %c0_39 = arith.constant 0 : index
      %62 = vector.load %arg12[%c0_38, %c0_39] : memref<16x32xf32, #tpu.memory_space<vmem>>, vector<16x32xf32>
      %c0_40 = arith.constant 0 : index
      %c0_41 = arith.constant 0 : index
      %63 = vector.load %arg11[%c0_40, %c0_41] : memref<16x32xf32, #tpu.memory_space<vmem>>, vector<16x32xf32>
      %64 = arith.addf %62, %63 : vector<16x32xf32>
      %c0_42 = arith.constant 0 : index
      %c0_43 = arith.constant 0 : index
      %65 = vector.load %arg12[%c0_42, %c0_43] : memref<16x32xf32, #tpu.memory_space<vmem>>, vector<16x32xf32>
      tpu.vector_store %arg12[%c0_42, %c0_43], %64 {strides = array<i32>} : memref<16x32xf32, #tpu.memory_space<vmem>>, vector<16x32xf32>,
    } else {
    }
    %c0 = arith.constant 0 : index
    %c0_3 = arith.constant 0 : index
    %6 = vector.load %arg12[%c0, %c0_3] : memref<16x32xf32, #tpu.memory_space<vmem>>, vector<16x32xf32>
    %c0_4 = arith.constant 0 : index
    %c0_5 = arith.constant 0 : index
    %c0_6 = arith.constant 0 : index
    %7 = vector.load %arg3[%c0_4, %c0_5, %c0_6] : memref<1x1x32xf32, #tpu.memory_space<vmem>>, vector<1x1x32xf32>
    %8 = vector.shape_cast %7 : vector<1x1x32xf32> to vector<1x32xf32>
    %c0_7 = arith.constant 0 : index
    %c0_8 = arith.constant 0 : index
    %c0_9 = arith.constant 0 : index
    %9 = vector.load %arg4[%c0_7, %c0_8, %c0_9] : memref<1x1x32xf32, #tpu.memory_space<vmem>>, vector<1x1x32xf32>
    %10 = vector.shape_cast %9 : vector<1x1x32xf32> to vector<1x32xf32>
    %cst = arith.constant dense<0.000000e+00> : vector<16xf32>
    %11 = vector.multi_reduction <add>, %6, %cst [1] : vector<16x32xf32> to vector<16xf32>
    %12 = vector.shape_cast %11 : vector<16xf32> to vector<16x1xf32>
    %cst_10 = arith.constant 3.200000e+01 : f32
    %13 = vector.broadcast %cst_10 : f32 to vector<16x1xf32>
    %14 = arith.divf %12, %13 : vector<16x1xf32>
    %15 = vector.broadcast %14 : vector<16x1xf32> to vector<16x32xf32>
    %16 = arith.subf %6, %15 : vector<16x32xf32>
    %17 = arith.mulf %16, %16 : vector<16x32xf32>
    %cst_11 = arith.constant dense<0.000000e+00> : vector<16xf32>
    %18 = vector.multi_reduction <add>, %17, %cst_11 [1] : vector<16x32xf32> to vector<16xf32>
    %19 = vector.shape_cast %18 : vector<16xf32> to vector<16x1xf32>
    %cst_12 = arith.constant 3.200000e+01 : f32
    %20 = vector.broadcast %cst_12 : f32 to vector<16x1xf32>
    %21 = arith.divf %19, %20 : vector<16x1xf32>
    %cst_13 = arith.constant 9.99999974E-6 : f32
    %22 = vector.broadcast %cst_13 : f32 to vector<16x1xf32>
    %23 = arith.addf %21, %22 : vector<16x1xf32>
    %24 = math.rsqrt %23 : vector<16x1xf32>
    %25 = vector.broadcast %24 : vector<16x1xf32> to vector<16x32xf32>
    %26 = arith.mulf %16, %25 : vector<16x32xf32>
    %27 = vector.broadcast %8 : vector<1x32xf32> to vector<16x32xf32>
    %28 = arith.mulf %26, %27 : vector<16x32xf32>
    %29 = vector.broadcast %10 : vector<1x32xf32> to vector<16x32xf32>
    %30 = arith.addf %28, %29 : vector<16x32xf32>
    %c0_14 = arith.constant 0 : index
    %c0_15 = arith.constant 0 : index
    %c0_16 = arith.constant 0 : index
    %31 = vector.load %arg5[%c0_14, %c0_15, %c0_16] : memref<1x32x64xbf16, #tpu.memory_space<vmem>>, vector<1x32x64xbf16>
    %32 = vector.shape_cast %31 : vector<1x32x64xbf16> to vector<32x64xbf16>
    %c0_17 = arith.constant 0 : index
    %c0_18 = arith.constant 0 : index
    %c0_19 = arith.constant 0 : index
    %33 = vector.load %arg6[%c0_17, %c0_18, %c0_19] : memref<1x1x64xf32, #tpu.memory_space<vmem>>, vector<1x1x64xf32>
    %34 = vector.shape_cast %33 : vector<1x1x64xf32> to vector<1x64xf32>
    %c0_20 = arith.constant 0 : index
    %c0_21 = arith.constant 0 : index
    %c0_22 = arith.constant 0 : index
    %35 = vector.load %arg7[%c0_20, %c0_21, %c0_22] : memref<1x32x64xbf16, #tpu.memory_space<vmem>>, vector<1x32x64xbf16>
    %36 = vector.shape_cast %35 : vector<1x32x64xbf16> to vector<32x64xbf16>
    %c0_23 = arith.constant 0 : index
    %c0_24 = arith.constant 0 : index
    %c0_25 = arith.constant 0 : index
    %37 = vector.load %arg8[%c0_23, %c0_24, %c0_25] : memref<1x1x64xf32, #tpu.memory_space<vmem>>, vector<1x1x64xf32>
    %38 = vector.shape_cast %37 : vector<1x1x64xf32> to vector<1x64xf32>
    %c0_26 = arith.constant 0 : index
    %c0_27 = arith.constant 0 : index
    %c0_28 = arith.constant 0 : index
    %39 = vector.load %arg9[%c0_26, %c0_27, %c0_28] : memref<1x64x32xbf16, #tpu.memory_space<vmem>>, vector<1x64x32xbf16>
    %40 = vector.shape_cast %39 : vector<1x64x32xbf16> to vector<64x32xbf16>
    %c0_29 = arith.constant 0 : index
    %c0_30 = arith.constant 0 : index
    %c0_31 = arith.constant 0 : index
    %41 = vector.load %arg10[%c0_29, %c0_30, %c0_31] : memref<1x1x32xf32, #tpu.memory_space<vmem>>, vector<1x1x32xf32>
    %42 = vector.shape_cast %41 : vector<1x1x32xf32> to vector<1x32xf32>
    %43 = arith.truncf %30 : vector<16x32xf32> to vector<16x32xbf16>
    %cst_32 = arith.constant dense<0.000000e+00> : vector<16x64xf32>
    %44 = tpu.matmul %43, %32, %cst_32 {dimension_numbers = #tpu.dot_dimension_numbers<[1], [0], [0], [1], [0, 0, 1, 1], [], []>} : vector<16x32xbf16>, vector<32x64xbf16>, vector<16x64xf32> -> vector<16x64xf32>
    %45 = vector.broadcast %34 : vector<1x64xf32> to vector<16x64xf32>
    %46 = arith.addf %44, %45 : vector<16x64xf32>
    %cst_33 = arith.constant dense<0.000000e+00> : vector<16x64xf32>
    %47 = tpu.matmul %43, %36, %cst_33 {dimension_numbers = #tpu.dot_dimension_numbers<[1], [0], [0], [1], [0, 0, 1, 1], [], []>} : vector<16x32xbf16>, vector<32x64xbf16>, vector<16x64xf32> -> vector<16x64xf32>
    %48 = vector.broadcast %38 : vector<1x64xf32> to vector<16x64xf32>
    %49 = arith.addf %47, %48 : vector<16x64xf32>
    %50 = arith.negf %49 : vector<16x64xf32>
    %51 = math.exp %50 : vector<16x64xf32>
    %cst_34 = arith.constant 1.000000e+00 : f32
    %52 = vector.broadcast %cst_34 : f32 to vector<16x64xf32>
    %53 = arith.addf %52, %51 : vector<16x64xf32>
    %54 = arith.divf %52, %53 : vector<16x64xf32>
    %55 = arith.mulf %49, %54 : vector<16x64xf32>
    %56 = arith.mulf %46, %55 : vector<16x64xf32>
    %57 = arith.truncf %56 : vector<16x64xf32> to vector<16x64xbf16>
    %cst_35 = arith.constant dense<0.000000e+00> : vector<16x32xf32>
    %58 = tpu.matmul %57, %40, %cst_35 {dimension_numbers = #tpu.dot_dimension_numbers<[1], [0], [0], [1], [0, 0, 1, 1], [], []>} : vector<16x64xbf16>, vector<64x32xbf16>, vector<16x32xf32> -> vector<16x32xf32>
    %59 = vector.broadcast %42 : vector<1x32xf32> to vector<16x32xf32>
    %60 = arith.addf %58, %59 : vector<16x32xf32>
    %c0_36 = arith.constant 0 : index
    %c0_37 = arith.constant 0 : index
    %61 = vector.load %arg11[%c0_36, %c0_37] : memref<16x32xf32, #tpu.memory_space<vmem>>, vector<16x32xf32>
    tpu.vector_store %arg11[%c0_36, %c0_37], %60 {strides = array<i32>} : memref<16x32xf32, #tpu.memory_space<vmem>>, vector<16x32xf32>,
    return
  }
  func.func @transform_0(%arg0: i32, %arg1: i32) -> (i32, i32) {
    %c0_i32 = arith.constant 0 : i32
    %c0_i32_0 = arith.constant 0 : i32
    return %arg0, %c0_i32 : i32, i32
  }
  func.func @transform_1(%arg0: i32, %arg1: i32) -> (i32, i32, i32) {
    %c0_i32 = arith.constant 0 : i32
    %c0_i32_0 = arith.constant 0 : i32
    %c0_i32_1 = arith.constant 0 : i32
    return %arg1, %c0_i32, %c0_i32_0 : i32, i32, i32
  }
  func.func @transform_2(%arg0: i32, %arg1: i32) -> (i32, i32, i32) {
    %c0_i32 = arith.constant 0 : i32
    %c0_i32_0 = arith.constant 0 : i32
    %c0_i32_1 = arith.constant 0 : i32
    return %arg1, %c0_i32, %c0_i32_0 : i32, i32, i32
  }
  func.func @transform_3(%arg0: i32, %arg1: i32) -> (i32, i32, i32) {
    %c0_i32 = arith.constant 0 : i32
    %c0_i32_0 = arith.constant 0 : i32
    %c0_i32_1 = arith.constant 0 : i32
    return %arg1, %c0_i32, %c0_i32_0 : i32, i32, i32
  }
  func.func @transform_4(%arg0: i32, %arg1: i32) -> (i32, i32, i32) {
    %c0_i32 = arith.constant 0 : i32
    %c0_i32_0 = arith.constant 0 : i32
    %c0_i32_1 = arith.constant 0 : i32
    return %arg1, %c0_i32, %c0_i32_0 : i32, i32, i32
  }
  func.func @transform_5(%arg0: i32, %arg1: i32) -> (i32, i32, i32) {
    %c0_i32 = arith.constant 0 : i32
    %c0_i32_0 = arith.constant 0 : i32
    %c0_i32_1 = arith.constant 0 : i32
    return %arg1, %c0_i32, %c0_i32_0 : i32, i32, i32
  }
  func.func @transform_6(%arg0: i32, %arg1: i32) -> (i32, i32, i32) {
    %c0_i32 = arith.constant 0 : i32
    %c0_i32_0 = arith.constant 0 : i32
    %c0_i32_1 = arith.constant 0 : i32
    return %arg1, %c0_i32, %c0_i32_0 : i32, i32, i32
  }
  func.func @transform_7(%arg0: i32, %arg1: i32) -> (i32, i32, i32) {
    %c0_i32 = arith.constant 0 : i32
    %c0_i32_0 = arith.constant 0 : i32
    %c0_i32_1 = arith.constant 0 : i32
    return %arg1, %c0_i32, %c0_i32_0 : i32, i32, i32
  }
  func.func @transform_8(%arg0: i32, %arg1: i32) -> (i32, i32, i32) {
    %c0_i32 = arith.constant 0 : i32
    %c0_i32_0 = arith.constant 0 : i32
    %c0_i32_1 = arith.constant 0 : i32
    return %arg1, %c0_i32, %c0_i32_0 : i32, i32, i32
  }
  func.func @transform_9(%arg0: i32, %arg1: i32) -> (i32, i32) {
    %c0_i32 = arith.constant 0 : i32
    %c0_i32_0 = arith.constant 0 : i32
    return %arg0, %c0_i32 : i32, i32
  }
  func.func @transform_10(%arg0: i32, %arg1: i32) -> (i32, i32) {
    %c0_i32 = arith.constant 0 : i32
    %c0_i32_0 = arith.constant 0 : i32
    return %arg0, %c0_i32 : i32, i32
  }
}

module attributes {stable_mosaic.version = 11 : i64} {
  func.func @tail_kernel(%arg0: i32, %arg1: memref<16x32xf32, #tpu.memory_space<vmem>>, %arg2: memref<16x32xf32, #tpu.memory_space<vmem>>, %arg3: memref<1x32xf32, #tpu.memory_space<vmem>>, %arg4: memref<1x32xf32, #tpu.memory_space<vmem>>, %arg5: memref<1x32xf32, #tpu.memory_space<vmem>>, %arg6: memref<1x32xf32, #tpu.memory_space<vmem>>, %arg7: memref<32x64xbf16, #tpu.memory_space<vmem>>, %arg8: memref<1x64xf32, #tpu.memory_space<vmem>>, %arg9: memref<32x64xbf16, #tpu.memory_space<vmem>>, %arg10: memref<1x64xf32, #tpu.memory_space<vmem>>, %arg11: memref<64x16xbf16, #tpu.memory_space<vmem>>, %arg12: memref<1x16xf32, #tpu.memory_space<vmem>>, %arg13: memref<16x16xf32, #tpu.memory_space<vmem>>) attributes {dimension_semantics = [#tpu.dimension_semantics<parallel>], iteration_bounds = array<i64: 1>, scalar_prefetch = 0 : i64, scratch_operands = 0 : i64, tpu.core_type = #tpu.core_type<tc>, window_params = [{transform_indices = @transform_0, window_bounds = array<i64: 16, 32>}, {transform_indices = @transform_1, window_bounds = array<i64: 16, 32>}, {pipeline_mode = #tpu.pipeline_mode<synchronous>, transform_indices = @transform_2, window_bounds = array<i64: 1, 32>}, {pipeline_mode = #tpu.pipeline_mode<synchronous>, transform_indices = @transform_3, window_bounds = array<i64: 1, 32>}, {pipeline_mode = #tpu.pipeline_mode<synchronous>, transform_indices = @transform_4, window_bounds = array<i64: 1, 32>}, {pipeline_mode = #tpu.pipeline_mode<synchronous>, transform_indices = @transform_5, window_bounds = array<i64: 1, 32>}, {pipeline_mode = #tpu.pipeline_mode<synchronous>, transform_indices = @transform_6, window_bounds = array<i64: 32, 64>}, {pipeline_mode = #tpu.pipeline_mode<synchronous>, transform_indices = @transform_7, window_bounds = array<i64: 1, 64>}, {pipeline_mode = #tpu.pipeline_mode<synchronous>, transform_indices = @transform_8, window_bounds = array<i64: 32, 64>}, {pipeline_mode = #tpu.pipeline_mode<synchronous>, transform_indices = @transform_9, window_bounds = array<i64: 1, 64>}, {pipeline_mode = #tpu.pipeline_mode<synchronous>, transform_indices = @transform_10, window_bounds = array<i64: 64, 16>}, {pipeline_mode = #tpu.pipeline_mode<synchronous>, transform_indices = @transform_11, window_bounds = array<i64: 1, 16>}, {transform_indices = @transform_12, window_bounds = array<i64: 16, 16>}]} {
    %c0 = arith.constant 0 : index
    %c0_0 = arith.constant 0 : index
    %0 = vector.load %arg2[%c0, %c0_0] : memref<16x32xf32, #tpu.memory_space<vmem>>, vector<16x32xf32>
    %c0_1 = arith.constant 0 : index
    %c0_2 = arith.constant 0 : index
    %1 = vector.load %arg1[%c0_1, %c0_2] : memref<16x32xf32, #tpu.memory_space<vmem>>, vector<16x32xf32>
    %2 = arith.addf %0, %1 : vector<16x32xf32>
    %c0_3 = arith.constant 0 : index
    %c0_4 = arith.constant 0 : index
    %3 = vector.load %arg3[%c0_3, %c0_4] : memref<1x32xf32, #tpu.memory_space<vmem>>, vector<1x32xf32>
    %c0_5 = arith.constant 0 : index
    %c0_6 = arith.constant 0 : index
    %4 = vector.load %arg4[%c0_5, %c0_6] : memref<1x32xf32, #tpu.memory_space<vmem>>, vector<1x32xf32>
    %cst = arith.constant dense<0.000000e+00> : vector<16xf32>
    %5 = vector.multi_reduction <add>, %2, %cst [1] : vector<16x32xf32> to vector<16xf32>
    %6 = vector.shape_cast %5 : vector<16xf32> to vector<16x1xf32>
    %cst_7 = arith.constant 3.200000e+01 : f32
    %7 = vector.broadcast %cst_7 : f32 to vector<16x1xf32>
    %8 = arith.divf %6, %7 : vector<16x1xf32>
    %9 = vector.broadcast %8 : vector<16x1xf32> to vector<16x32xf32>
    %10 = arith.subf %2, %9 : vector<16x32xf32>
    %11 = arith.mulf %10, %10 : vector<16x32xf32>
    %cst_8 = arith.constant dense<0.000000e+00> : vector<16xf32>
    %12 = vector.multi_reduction <add>, %11, %cst_8 [1] : vector<16x32xf32> to vector<16xf32>
    %13 = vector.shape_cast %12 : vector<16xf32> to vector<16x1xf32>
    %cst_9 = arith.constant 3.200000e+01 : f32
    %14 = vector.broadcast %cst_9 : f32 to vector<16x1xf32>
    %15 = arith.divf %13, %14 : vector<16x1xf32>
    %cst_10 = arith.constant 9.99999974E-6 : f32
    %16 = vector.broadcast %cst_10 : f32 to vector<16x1xf32>
    %17 = arith.addf %15, %16 : vector<16x1xf32>
    %18 = math.rsqrt %17 : vector<16x1xf32>
    %19 = vector.broadcast %18 : vector<16x1xf32> to vector<16x32xf32>
    %20 = arith.mulf %10, %19 : vector<16x32xf32>
    %21 = vector.broadcast %3 : vector<1x32xf32> to vector<16x32xf32>
    %22 = arith.mulf %20, %21 : vector<16x32xf32>
    %23 = vector.broadcast %4 : vector<1x32xf32> to vector<16x32xf32>
    %24 = arith.addf %22, %23 : vector<16x32xf32>
    %25 = arith.addf %2, %24 : vector<16x32xf32>
    %c0_11 = arith.constant 0 : index
    %c0_12 = arith.constant 0 : index
    %26 = vector.load %arg5[%c0_11, %c0_12] : memref<1x32xf32, #tpu.memory_space<vmem>>, vector<1x32xf32>
    %c0_13 = arith.constant 0 : index
    %c0_14 = arith.constant 0 : index
    %27 = vector.load %arg6[%c0_13, %c0_14] : memref<1x32xf32, #tpu.memory_space<vmem>>, vector<1x32xf32>
    %cst_15 = arith.constant dense<0.000000e+00> : vector<16xf32>
    %28 = vector.multi_reduction <add>, %25, %cst_15 [1] : vector<16x32xf32> to vector<16xf32>
    %29 = vector.shape_cast %28 : vector<16xf32> to vector<16x1xf32>
    %cst_16 = arith.constant 3.200000e+01 : f32
    %30 = vector.broadcast %cst_16 : f32 to vector<16x1xf32>
    %31 = arith.divf %29, %30 : vector<16x1xf32>
    %32 = vector.broadcast %31 : vector<16x1xf32> to vector<16x32xf32>
    %33 = arith.subf %25, %32 : vector<16x32xf32>
    %34 = arith.mulf %33, %33 : vector<16x32xf32>
    %cst_17 = arith.constant dense<0.000000e+00> : vector<16xf32>
    %35 = vector.multi_reduction <add>, %34, %cst_17 [1] : vector<16x32xf32> to vector<16xf32>
    %36 = vector.shape_cast %35 : vector<16xf32> to vector<16x1xf32>
    %cst_18 = arith.constant 3.200000e+01 : f32
    %37 = vector.broadcast %cst_18 : f32 to vector<16x1xf32>
    %38 = arith.divf %36, %37 : vector<16x1xf32>
    %cst_19 = arith.constant 9.99999974E-6 : f32
    %39 = vector.broadcast %cst_19 : f32 to vector<16x1xf32>
    %40 = arith.addf %38, %39 : vector<16x1xf32>
    %41 = math.rsqrt %40 : vector<16x1xf32>
    %42 = vector.broadcast %41 : vector<16x1xf32> to vector<16x32xf32>
    %43 = arith.mulf %33, %42 : vector<16x32xf32>
    %44 = vector.broadcast %26 : vector<1x32xf32> to vector<16x32xf32>
    %45 = arith.mulf %43, %44 : vector<16x32xf32>
    %46 = vector.broadcast %27 : vector<1x32xf32> to vector<16x32xf32>
    %47 = arith.addf %45, %46 : vector<16x32xf32>
    %c0_20 = arith.constant 0 : index
    %c0_21 = arith.constant 0 : index
    %48 = vector.load %arg7[%c0_20, %c0_21] : memref<32x64xbf16, #tpu.memory_space<vmem>>, vector<32x64xbf16>
    %c0_22 = arith.constant 0 : index
    %c0_23 = arith.constant 0 : index
    %49 = vector.load %arg8[%c0_22, %c0_23] : memref<1x64xf32, #tpu.memory_space<vmem>>, vector<1x64xf32>
    %c0_24 = arith.constant 0 : index
    %c0_25 = arith.constant 0 : index
    %50 = vector.load %arg9[%c0_24, %c0_25] : memref<32x64xbf16, #tpu.memory_space<vmem>>, vector<32x64xbf16>
    %c0_26 = arith.constant 0 : index
    %c0_27 = arith.constant 0 : index
    %51 = vector.load %arg10[%c0_26, %c0_27] : memref<1x64xf32, #tpu.memory_space<vmem>>, vector<1x64xf32>
    %c0_28 = arith.constant 0 : index
    %c0_29 = arith.constant 0 : index
    %52 = vector.load %arg11[%c0_28, %c0_29] : memref<64x16xbf16, #tpu.memory_space<vmem>>, vector<64x16xbf16>
    %c0_30 = arith.constant 0 : index
    %c0_31 = arith.constant 0 : index
    %53 = vector.load %arg12[%c0_30, %c0_31] : memref<1x16xf32, #tpu.memory_space<vmem>>, vector<1x16xf32>
    %54 = arith.truncf %47 : vector<16x32xf32> to vector<16x32xbf16>
    %cst_32 = arith.constant dense<0.000000e+00> : vector<16x64xf32>
    %55 = tpu.matmul %54, %48, %cst_32 {dimension_numbers = #tpu.dot_dimension_numbers<[1], [0], [0], [1], [0, 0, 1, 1], [], []>} : vector<16x32xbf16>, vector<32x64xbf16>, vector<16x64xf32> -> vector<16x64xf32>
    %56 = vector.broadcast %49 : vector<1x64xf32> to vector<16x64xf32>
    %57 = arith.addf %55, %56 : vector<16x64xf32>
    %cst_33 = arith.constant dense<0.000000e+00> : vector<16x64xf32>
    %58 = tpu.matmul %54, %50, %cst_33 {dimension_numbers = #tpu.dot_dimension_numbers<[1], [0], [0], [1], [0, 0, 1, 1], [], []>} : vector<16x32xbf16>, vector<32x64xbf16>, vector<16x64xf32> -> vector<16x64xf32>
    %59 = vector.broadcast %51 : vector<1x64xf32> to vector<16x64xf32>
    %60 = arith.addf %58, %59 : vector<16x64xf32>
    %61 = arith.negf %60 : vector<16x64xf32>
    %62 = math.exp %61 : vector<16x64xf32>
    %cst_34 = arith.constant 1.000000e+00 : f32
    %63 = vector.broadcast %cst_34 : f32 to vector<16x64xf32>
    %64 = arith.addf %63, %62 : vector<16x64xf32>
    %65 = arith.divf %63, %64 : vector<16x64xf32>
    %66 = arith.mulf %60, %65 : vector<16x64xf32>
    %67 = arith.mulf %57, %66 : vector<16x64xf32>
    %68 = arith.truncf %67 : vector<16x64xf32> to vector<16x64xbf16>
    %cst_35 = arith.constant dense<0.000000e+00> : vector<16x16xf32>
    %69 = tpu.matmul %68, %52, %cst_35 {dimension_numbers = #tpu.dot_dimension_numbers<[1], [0], [0], [1], [0, 0, 1, 1], [], []>} : vector<16x64xbf16>, vector<64x16xbf16>, vector<16x16xf32> -> vector<16x16xf32>
    %70 = vector.broadcast %53 : vector<1x16xf32> to vector<16x16xf32>
    %71 = arith.addf %69, %70 : vector<16x16xf32>
    %c0_36 = arith.constant 0 : index
    %c0_37 = arith.constant 0 : index
    %72 = vector.load %arg13[%c0_36, %c0_37] : memref<16x16xf32, #tpu.memory_space<vmem>>, vector<16x16xf32>
    tpu.vector_store %arg13[%c0_36, %c0_37], %71 {strides = array<i32>} : memref<16x16xf32, #tpu.memory_space<vmem>>, vector<16x16xf32>,
    return
  }
  func.func @transform_0(%arg0: i32) -> (i32, i32) {
    %c0_i32 = arith.constant 0 : i32
    %c0_i32_0 = arith.constant 0 : i32
    return %arg0, %c0_i32 : i32, i32
  }
  func.func @transform_1(%arg0: i32) -> (i32, i32) {
    %c0_i32 = arith.constant 0 : i32
    %c0_i32_0 = arith.constant 0 : i32
    return %arg0, %c0_i32 : i32, i32
  }
  func.func @transform_2(%arg0: i32) -> (i32, i32) {
    %c0_i32 = arith.constant 0 : i32
    %c0_i32_0 = arith.constant 0 : i32
    %c0_i32_1 = arith.constant 0 : i32
    return %c0_i32, %c0_i32_0 : i32, i32
  }
  func.func @transform_3(%arg0: i32) -> (i32, i32) {
    %c0_i32 = arith.constant 0 : i32
    %c0_i32_0 = arith.constant 0 : i32
    %c0_i32_1 = arith.constant 0 : i32
    return %c0_i32, %c0_i32_0 : i32, i32
  }
  func.func @transform_4(%arg0: i32) -> (i32, i32) {
    %c0_i32 = arith.constant 0 : i32
    %c0_i32_0 = arith.constant 0 : i32
    %c0_i32_1 = arith.constant 0 : i32
    return %c0_i32, %c0_i32_0 : i32, i32
  }
  func.func @transform_5(%arg0: i32) -> (i32, i32) {
    %c0_i32 = arith.constant 0 : i32
    %c0_i32_0 = arith.constant 0 : i32
    %c0_i32_1 = arith.constant 0 : i32
    return %c0_i32, %c0_i32_0 : i32, i32
  }
  func.func @transform_6(%arg0: i32) -> (i32, i32) {
    %c0_i32 = arith.constant 0 : i32
    %c0_i32_0 = arith.constant 0 : i32
    %c0_i32_1 = arith.constant 0 : i32
    return %c0_i32, %c0_i32_0 : i32, i32
  }
  func.func @transform_7(%arg0: i32) -> (i32, i32) {
    %c0_i32 = arith.constant 0 : i32
    %c0_i32_0 = arith.constant 0 : i32
    %c0_i32_1 = arith.constant 0 : i32
    return %c0_i32, %c0_i32_0 : i32, i32
  }
  func.func @transform_8(%arg0: i32) -> (i32, i32) {
    %c0_i32 = arith.constant 0 : i32
    %c0_i32_0 = arith.constant 0 : i32
    %c0_i32_1 = arith.constant 0 : i32
    return %c0_i32, %c0_i32_0 : i32, i32
  }
  func.func @transform_9(%arg0: i32) -> (i32, i32) {
    %c0_i32 = arith.constant 0 : i32
    %c0_i32_0 = arith.constant 0 : i32
    %c0_i32_1 = arith.constant 0 : i32
    return %c0_i32, %c0_i32_0 : i32, i32
  }
  func.func @transform_10(%arg0: i32) -> (i32, i32) {
    %c0_i32 = arith.constant 0 : i32
    %c0_i32_0 = arith.constant 0 : i32
    %c0_i32_1 = arith.constant 0 : i32
    return %c0_i32, %c0_i32_0 : i32, i32
  }
  func.func @transform_11(%arg0: i32) -> (i32, i32) {
    %c0_i32 = arith.constant 0 : i32
    %c0_i32_0 = arith.constant 0 : i32
    %c0_i32_1 = arith.constant 0 : i32
    return %c0_i32, %c0_i32_0 : i32, i32
  }
  func.func @transform_12(%arg0: i32) -> (i32, i32) {
    %c0_i32 = arith.constant 0 : i32
    %c0_i32_0 = arith.constant 0 : i32
    return %arg0, %c0_i32 : i32, i32
  }
}

</mosaic_0001>

<bundles_post_ra>
// kernel: mamba_pod_time_forward.2
= control target key start
LH: loop header
LB: loop body
LE: loop exit
PB: predicated region body
PF: predicated region fallthrough
CT: control target
= control target key end

     0   :  { %s1703_s0 = inlined_call_operand.vmem [shape: f32[16,32], index: 0, kind: input, shape index: {}]   ;;  %s1704_s1 = inlined_call_operand.vmem [shape: f32[2,1,32], index: 1, kind: input, shape index: {}]   ;;  %s1705_s2 = inlined_call_operand.vmem [shape: f32[2,1,32], index: 2, kind: input, shape index: {}, may-alias: {2,8}]   ;;  %s1706_s3 = inlined_call_operand.hbm [shape: bf16[2,32,64], index: 3, kind: input, shape index: {}]   ;;  %s1707_s4 = inlined_call_operand.vmem [shape: f32[2,1,64], index: 4, kind: input, shape index: {}, may-alias: {4,6}]   ;;  %s1708_s5 = inlined_call_operand.vmem [shape: bf16[2,32,64], index: 5, kind: input, shape index: {}]   ;;  %s1709_s6 = inlined_call_operand.vmem [shape: f32[2,1,64], index: 6, kind: input, shape index: {}, may-alias: {4,6}]   ;;  %s1710_s7 = inlined_call_operand.hbm [shape: bf16[2,64,32], index: 7, kind: input, shape index: {}]   ;;  %s1711_s8 = inlined_call_operand.vmem [shape: f32[2,1,32], index: 8, kind: input, shape index: {}, may-alias: {2,8}]   ;;  %s1712_s9 = inlined_call_operand.vmem [shape: f32[16,32], index: 9, kind: output, shape index: {0}]   ;;  %s1713_s10 = inlined_call_operand.vmem [shape: f32[16,32], index: 10, kind: output, shape index: {1}]  }
   0x1   :  { %1718 = sst [smem:[#allocation12_spill]] %s1706_s3 }
   0x2   :  { %1719 = sst [smem:[#allocation13_spill]] %s1710_s7 }
   0x3   :  { %16 = vsyncpa [#allocation3], 0 }
   0x4   :  { %18 = vsyncpa [#allocation3 + $0x1], 0 }
   0x5   :  { %19 = vsyncpa [#allocation5], 0 }
   0x6   :  { %21 = vsyncpa [#allocation5 + $0x1], 0  ;;  %s1408_s13 = smov 0   ;;  %s1410_s14 = smov 0  }
   0x7   :  { %s1412_s15 = smov 0   ;;  %s1414_s16 = smov 0  }
   0x8   :  { %s1416_s17 = smov 0   ;;  %s1418_s18 = smov 0  }
   0x9 LB: > { %1720 = sst [smem:[#allocation8_spill]] %s1333_s15  ;;  %s1064_s19 = sadd.s32 4294967295, %s1345_s18   ;;  %s1345_s18 = sphi %s1418_s18, %s27_s18   ;;  %s1341_s17 = sphi %s1416_s17, %s1735_s17   ;;  %s1337_s16 = sphi %s1414_s16, %s1734_s16   ;;  %s1333_s15 = sphi %s1412_s15, %s1738_s15   ;;  %s1329_s14 = sphi %s1410_s14, %s1737_s14   ;;  %s1325_s13 = sphi %s1408_s13, %s1736_s13  }
   0xa   : > { %1721 = sst [smem:[#allocation9_spill]] %s1341_s17  ;;  %s36_s20 = sadd.s32 1, %s1341_s17 }
   0xb   : > { %p37_p0 = scmp.ge.s32.totalorder %s36_s20, 2  ;;  %s124_s21 = sadd.s32 1, %s1333_s15 }
   0xc   : > { %p131_p1 = scmp.ne.s32.totalorder %s1333_s15, %s1329_s14  ;;  %p132_p2 = scmp.eq.s32.totalorder %s1345_s18, 0 }
   0xd   : > { %s1740_s20 = smov (%p37_p0, %s36_s20), 0  ;;  %p137_p4 = scmp.ne.s32.totalorder %s1329_s14, %s1325_s13 }
   0xe   : > { %1722 = sst [smem:[#allocation10_spill]] %s1740_s20  ;;  %p1444_p3 = por %p132_p2, %p131_p1 }
   0xf   : > { %s121_s23 = ssub.s32 %s1341_s17, %s1740_s20  ;;  %p138_p5 = scmp.eq.s32.totalorder %s1064_s19, 0 }
  0x10   : > { %p122_p6 = scmp.eq.s32.totalorder %s121_s23, 0  ;;  %p1158_p8 = scmp.lt.s32.totalorder %s1345_s18, 2 }
  0x11   : > { %p1451_p7 = por %p138_p5, %p137_p4  ;;  %s1460_s26 = sand.u32 1, %s1333_s15  }
  0x12   : > { %s1457_s25 = scalar_select %p122_p6, %s1333_s15, %s124_s21  }
  0x13   : > { %s1724_s24 = scalar_select %p1451_p7, 1, 0 }
  0x14   : > { %1725 = sst [smem:[#allocation11_spill]] %s1457_s25  ;;  %s1105_s27 = sshll.u32 %s1341_s17, 8 }
  0x15   : > { %s1068_s28 = sshll.u32 %s1460_s26, 4  ;;  %s1726_s3 = sld [smem:[#allocation12_spill]] }
  0x16   : > { %s368_s12 = scalar_lea.vmem [#allocation2], %s1068_s28  ;;  %p1471_p9 = pnand %p1158_p8, %p1444_p3 }
  0x17   : > { %s375_s13 = sshll.u32 %s368_s12, 4  ;;  %s365_s21 = scalar_lea.sflag [#allocation3], %s1460_s26  ;;  %s1475_s13 = int_to_ptr.vmem [resolvable:$true] %s375_s13 }
  0x18   : > { %p1233_p11 = pneg %p1471_p9 }
  0x1b   : > { %s1467_s11 = scalar_lea.hbm %s1726_s3, %s1105_s27  ;;  %s1236_s22 = scalar_lea.hbm %s1726_s3, 512 }
  0x1c   : > { %s1231_s23 = scalar_lea.hbm %s1467_s11, 256  ;;  %p1237_p0 = scmp.lt.u32.totalorder %s1467_s11, %s1726_s3 }
  0x1d   : > { %p1232_p10 = scmp.ne.s32.totalorder %s1467_s11, %s1231_s23  ;;  %p1238_p1 = scmp.lt.u32.totalorder %s1236_s22, %s1231_s23 }
  0x1e   : > { %p1240_p3 = scmp.lt.u32.totalorder %s1231_s23, %s1467_s11 }
  0x1f   : > { %p1234_p12 = pnand %p1233_p11, %p1232_p10  ;;  %p1239_p2 = por %p1238_p1, %p1237_p0 }
  0x21   : > { %p1235_p13 = pneg %p1234_p12  ;;  %p1241_p4 = por %p1240_p3, %p1239_p2 }
  0x23   : > { %p1242_p5 = pnand %p1241_p4, %p1235_p13 }
  0x25   : > { %1245 = shalt.err (!%p1242_p5)
}
  0x26   : > { %s1246_s12 = scalar_lea.vmem %s1475_s13, 256  ;;  %s1347_s27 = smov [#allocation2]  }
  0x27   : > { %p1247_p6 = scmp.ne.s32.totalorder %s1475_s13, %s1246_s12  ;;  %s1251_s28 = sshll.u32 %s1347_s27, 4  ;;  %s1252_s28 = int_to_ptr.vmem [resolvable:$false] %s1251_s28 }
  0x28   : > { %s1253_s29 = scalar_lea.vmem %s1252_s28, 512  ;;  %p1254_p12 = scmp.lt.s32.totalorder %s1475_s13, %s1252_s28 }
  0x29   : > { %p1249_p8 = pnand %p1247_p6, %p1233_p11  ;;  %p1255_p0 = scmp.lt.s32.totalorder %s1253_s29, %s1246_s12 }
  0x2b   : > { %p1250_p10 = pneg %p1249_p8  ;;  %p1256_p1 = por %p1255_p0, %p1254_p12 }
  0x2d   : > { %p1257_p2 = pnand %p1256_p1, %p1250_p10 }
  0x2f   : > { %1260 = shalt.err (!%p1257_p2)
}
  0x30   : > { %s1348_s23 = smov 64   ;;  %s1349_s22 = smov 4  }
  0x31   : > { %1154 = dma.hbm_to_vmem [thread:$0]  (!%p1471_p9), %s1467_s11, 256, %s1475_s13, %s365_s21, %s1348_s23, %s1348_s23, %s1349_s22  }
  0x32   : > { %p1074_p13 = scmp.ge.s32.totalorder %s1345_s18, 1  ;;  %p430_p3 = scmp.lt.s32.totalorder %s1345_s18, 3 }
  0x33   : > { %s1071_s30 = sshll.u32 %s1460_s26, 5  ;;  %s1106_s27 = sshll.u32 %s1341_s17, 9 }
  0x34   : > { %p1511_p4 = pnand %p1074_p13, %p430_p3  ;;  %s409_s28 = scalar_lea.vmem [#allocation4], %s1071_s30 }
  0x35   : > { %s416_s29 = sshll.u32 %s409_s28, 4  ;;  %s1729_s7 = sld [smem:[#allocation13_spill]]  ;;  %s1521_s29 = int_to_ptr.vmem [resolvable:$true] %s416_s29 }
  0x36   : > { %s406_s11 = scalar_lea.sflag [#allocation5], %s1460_s26 }
  0x3b   : > { %s1519_s25 = scalar_lea.hbm %s1729_s7, %s1106_s27  ;;  %s1266_s28 = scalar_lea.hbm %s1729_s7, 1024 }
  0x3c   : > { %s1261_s13 = scalar_lea.hbm %s1519_s25, 512  ;;  %p1267_p10 = scmp.lt.u32.totalorder %s1519_s25, %s1729_s7 }
  0x3d   : > { %p1262_p5 = scmp.ne.s32.totalorder %s1519_s25, %s1261_s13  ;;  %p1268_p12 = scmp.lt.u32.totalorder %s1266_s28, %s1261_s13 }
  0x3e   : > { %p1270_p1 = scmp.lt.u32.totalorder %s1261_s13, %s1519_s25 }
  0x3f   : > { %p1264_p6 = pnand %p1262_p5, %p1233_p11  ;;  %p1269_p0 = por %p1268_p12, %p1267_p10 }
  0x41   : > { %p1265_p8 = pneg %p1264_p6  ;;  %p1271_p2 = por %p1270_p1, %p1269_p0 }
  0x43   : > { %p1272_p13 = pnand %p1271_p2, %p1265_p8 }
  0x45   : > { %1275 = shalt.err (!%p1272_p13)
}
  0x46   : > { %s1276_s27 = scalar_lea.vmem %s1521_s29, 512  ;;  %s1350_s21 = smov [#allocation4]  }
  0x47   : > { %p1277_p3 = scmp.ne.s32.totalorder %s1521_s29, %s1276_s27  ;;  %s1281_s30 = sshll.u32 %s1350_s21, 4  ;;  %s1282_s30 = int_to_ptr.vmem [resolvable:$false] %s1281_s30 }
  0x48   : > { %s1283_s3 = scalar_lea.vmem %s1282_s30, 1024  ;;  %p1284_p7 = scmp.lt.s32.totalorder %s1521_s29, %s1282_s30 }
  0x49   : > { %p1279_p5 = pnand %p1277_p3, %p1233_p11  ;;  %p1285_p10 = scmp.lt.s32.totalorder %s1283_s3, %s1276_s27 }
  0x4b   : > { %p1280_p6 = pneg %p1279_p5  ;;  %p1286_p12 = por %p1285_p10, %p1284_p7 }
  0x4d   : > { %p1287_p0 = pnand %p1286_p12, %p1280_p6 }
  0x4f   : > { %1290 = shalt.err (!%p1287_p0)
}
  0x50   : > { %1157 = dma.hbm_to_vmem [thread:$0]  (!%p1471_p9), %s1519_s25, 512, %s1521_s29, %s406_s11, %s1348_s23, %s1348_s23, %s1349_s22  }
  0x51   : > { %434 = sbr.rel (%p1511_p4) target bundleno = 907 (0x38b), region = 56  ;;  %s436_s13 = sand.u32 (!%p1511_p4), 1, %s1329_s14  }
  0x52   : > { %s1075_s28 = sshll.u32 (!%p1511_p4), %s436_s13, 4  ;;  %s437_s20 = scalar_lea.sflag (!%p1511_p4), [#allocation3], %s436_s13 }
  0x53   : > { %s1555_s27 = scalar_lea.vmem (!%p1511_p4), [#allocation2], %s1075_s28  ;;  %p1730_p7 = scmp.ne.s32.totalorder (!%p1511_p4), %s1724_s24, 0 }
  0x58   : > { %1316 = dma.done.wait (%p1730_p7), %s437_s20, 256  }
  0x59   : > { %1318 = vsyncadd (%p1730_p7), %s437_s20, 4294967040  ;;  %s1076_s26 = sshll.u32 %s436_s13, 5  ;;  %s446_s19 = scalar_lea.sflag [#allocation5], %s436_s13 }
  0x5a   : > { %s1561_s21 = scalar_lea.vmem [#allocation4], %s1076_s26 }
  0x5b   : > { %1320 = dma.done.wait (%p1730_p7), %s446_s19, 512  }
  0x5c   : > { %1322 = vsyncadd (%p1730_p7), %s446_s19, 4294966784  ;;  %p527_p9 = scmp.lt.s32.totalorder %s1337_s16, 1  ;;  %p1079_p11 = scmp.ne.s32.totalorder %s1337_s16, 0 }
  0x5d   : > { %v564_v0 = vld [vmem:[%s1703_s0] sm:$0xff] (!%p1079_p11)  ;;  %vm566_vm0 = vcmask (!%p1079_p11), 261120   ;;  %v565_v1 = vld [vmem:[%s1703_s0 + $0x8] sm:$0xff] (!%p1079_p11) }
  0x5e   : > { %s1569_s25 = scalar_select %p527_p9, %s1337_s16, 1 }
  0x5f   : > { %563 = sbr.rel (%p1079_p11) target bundleno = 102 (0x66), region = 68  ;;  %567 = vst.msk [vmem:[%s1713_s10] sm:$0xff] (!%p1079_p11), %vm566_vm0, %v564_v0  ;;  %568 = vst.msk [vmem:[%s1713_s10 + $0x8] sm:$0xff] (!%p1079_p11), %vm566_vm0, %v565_v1 }
  0x60   : > { %s532_s24 = scalar_lea.vmem %s1705_s2, %s1569_s25  ;;  %s535_s13 = scalar_lea.vmem %s1707_s4, %s1569_s25 }
  0x61   : > { %s1107_s28 = sshll.u32 %s1569_s25, 4  ;;  %s543_s7 = scalar_lea.vmem %s1709_s6, %s1569_s25 }
  0x62   : > { %s1587_s19 = scalar_lea.vmem %s1708_s5, %s1107_s28  ;;  %s546_s15 = scalar_lea.vmem %s1711_s8, %s1569_s25 }
  0x66 PF: > { %p1080_p4 = scmp.le.s32.totalorder %s1337_s16, 0 }
  0x67   : > { %v573_v2 = vld [vmem:[%s1713_s10] sm:$0xff] (!%p1080_p4)  ;;  %vm579_vm1 = vcmask (!%p1080_p4), 261120   ;;  %v574_v4 = vld [vmem:[%s1713_s10 + $0x8] sm:$0xff] (!%p1080_p4) }
  0x68   : > { %572 = sbr.rel (%p1080_p4) target bundleno = 111 (0x6f), region = 72  ;;  %v575_v3 = vld [vmem:[%s1712_s9] sm:$0xff] (!%p1080_p4)  ;;  %v576_v6 = vld [vmem:[%s1712_s9 + $0x8] sm:$0xff] (!%p1080_p4) }
  0x69   : > { %v577_v5 = vadd.f32 (!%p1080_p4), %v575_v3, %v573_v2  ;;  %v578_v7 = vadd.f32 (!%p1080_p4), %v576_v6, %v574_v4 }
  0x6b   : > { %580 = vst.msk [vmem:[%s1713_s10] sm:$0xff] (!%p1080_p4), %vm579_vm1, %v577_v5  ;;  %581 = vst.msk [vmem:[%s1713_s10 + $0x8] sm:$0xff] (!%p1080_p4), %vm579_vm1, %v578_v7 }
  0x6f PF: > { %vm586_vm2 = vcmask 261120   ;;  %v1211_v22 = vld [vmem:[%s1555_s27] sm:$0xff]   ;;  %v1351_v23 = vmov 0.0   ;;  %v1212_v24 = vld [vmem:[%s1555_s27 + $0x8] sm:$0xff]   ;;  %vm1352_vm3 = vmmov 0   ;;  %s1731_s30 = scalar_lea.vmem %s1704_s1, %s1569_s25  ;;  %vm818_vm4 = vcmask 523264  }
  0x70   : > { %1119 = vmatprep.subr.bf16.mxu1 %v1351_v23  ;;  %1135 = vmatprep.subr.bf16.mxu0 %v1351_v23  ;;  %v1081_v33 = vld [vmem:[%s1731_s30] ss:$0 sm:$0xff]  ;;  %v1214_v43 = vld [vmem:[%s1587_s19 + $0x8] sm:$0xff]   ;;  %v1217_v46 = vld [vmem:[%s1561_s21 + $0x10] sm:$0xff]  }
  0x71   : > { %1120 = vmatpush3.bf16.msra.mxu1 %v1211_v22  ;;  %1123 = vmatprep.mubr.msk.bf16.mxu1 %vm1352_vm3, %v1351_v23  ;;  %v1082_v37 = vld [vmem:[%s532_s24] ss:$0 sm:$0xff]  ;;  %v1216_v45 = vld [vmem:[%s1561_s21 + $0x8] sm:$0xff]   ;;  %v1218_v47 = vld [vmem:[%s1561_s21 + $0x18] sm:$0xff]  }
  0x72   : > { %v582_v8 = vld [vmem:[%s1713_s10] sm:$0xff]  ;;  %v583_v9 = vld [vmem:[%s1713_s10 + $0x8] sm:$0xff]  ;;  %1121 = vmatprep.subr.bf16.mxu1 %v1351_v23  ;;  %1143 = vmatprep.mubr.msk.bf16.mxu0 %vm1352_vm3, %v1351_v23 }
  0x73   : > { %v587_v10 = vsel %vm586_vm2, %v582_v8, 0.0  ;;  %v590_v11 = vsel %vm586_vm2, %v583_v9, 0.0  ;;  %v1213_v41 = vld [vmem:[%s1587_s19] sm:$0xff]  }
  0x74   : > { %588 = vadd.xlane.f32.xlu0 %v587_v10  ;;  %v1215_v44 = vld [vmem:[%s1561_s21] sm:$0xff]  }
  0x75   : > { %1122 = vmatpush3.bf16.msra.mxu1 %v1212_v24  ;;  %1136 = vmatpush3.bf16.msra.mxu0 %v1215_v44  ;;  %v1087_v52 = vld [vmem:[%s543_s7] ss:$0 sm:$0xff] }
  0x76   : > { %1127 = vmatprep.subr.bf16.mxu1 %v1351_v23  ;;  %1137 = vmatprep.subr.bf16.mxu0 %v1351_v23  ;;  %v1083_v1 = vld [vmem:[%s535_s13] ss:$0 sm:$0xff] }
  0x78   : > { %591 = vadd.xlane.f32.xlu0 %v590_v11  ;;  %v1093_v11 = vld [vmem:[%s546_s15] ss:$0 sm:$0xff] }
  0x79   : > { %1138 = vmatpush3.bf16.msra.mxu0 %v1216_v45 }
  0x7a   : > { %1139 = vmatprep.subr.bf16.mxu0 %v1351_v23 }
  0x7d   : > { %1140 = vmatpush3.bf16.msra.mxu0 %v1217_v46 }
  0x7e   : > { %1141 = vmatprep.subr.bf16.mxu0 %v1351_v23 }
  0x81   : > { %1142 = vmatpush3.bf16.msra.mxu0 %v1218_v47 }
 0x101   : > { %v589_v12 = vpop.xlane.xlu0 %588 }
 0x102   : > { %v594_v13 = vmul.f32 0.03125, %v589_v12 }
 0x104   : > { %v596_v14 = vsub.f32 %v582_v8, %v594_v13 }
 0x105   : > { %v592_v15 = vpop.xlane.xlu0 %591 }
 0x106   : > { %v595_v16 = vmul.f32 0.03125, %v592_v15  ;;  %v598_v17 = vmul.f32 %v596_v14, %v596_v14 }
 0x108   : > { %v597_v18 = vsub.f32 %v583_v9, %v595_v16  ;;  %v600_v19 = vsel %vm586_vm2, %v598_v17, 0.0 }
 0x109   : > { %601 = vadd.xlane.f32.xlu1 %v600_v19 }
 0x10a   : > { %v599_v20 = vmul.f32 %v597_v18, %v597_v18 }
 0x10c   : > { %v603_v21 = vsel %vm586_vm2, %v599_v20, 0.0 }
 0x10d   : > { %604 = vadd.xlane.f32.xlu1 %v603_v21 }
 0x196   : > { %v602_v25 = vpop.xlane.xlu1 %601 }
 0x197   : > { %v606_v26 = vmul.f32 0.03125, %v602_v25 }
 0x199   : > { %v608_v27 = vadd.f32 1e-05, %v606_v26 }
 0x19a   : > { %v605_v28 = vpop.xlane.xlu1 %604 }
 0x19b   : > { %1219 = vrsqrt.f32 %v608_v27  ;;  %v607_v29 = vmul.f32 0.03125, %v605_v28 }
 0x19d   : > { %v609_v30 = vadd.f32 1e-05, %v607_v29 }
 0x19f   : > { %1221 = vrsqrt.f32 %v609_v30 }
 0x1a5   : > { %v1220_v31 = vpop.eup %1219 }
 0x1a6   : > { %v612_v32 = vmul.f32 %v1220_v31, %v596_v14 }
 0x1a8   : > { %v620_v36 = vmul.f32 %v1081_v33, %v612_v32 }
 0x1a9   : > { %v1222_v34 = vpop.eup %1221 }
 0x1aa   : > { %v613_v35 = vmul.f32 %v1222_v34, %v597_v18  ;;  %v628_v39 = vadd.f32 %v1082_v37, %v620_v36 }
 0x1ac   : > { %v621_v38 = vmul.f32 %v1081_v33, %v613_v35 }
 0x1ae   : > { %v629_v40 = vadd.f32 %v1082_v37, %v621_v38 }
 0x1b0   : > { %v649_v42 = vpack.c.bf16 %v629_v40, %v628_v39 }
 0x1b2   : > { %1124 = vmatmul.mubr.msk.bf16.vlgmr.msra.gmra.mrb[0].mxu1 %vm586_vm2, %v649_v42 }
 0x1b3   : > { %1128 = vmatpush3.bf16.msra.mxu1 %v1213_v41  ;;  %1131 = vmatprep.mubr.msk.bf16.mxu1 %vm1352_vm3, %v1351_v23 }
 0x1b4   : > { %1129 = vmatprep.subr.bf16.mxu1 %v1351_v23 }
 0x1b7   : > { %1130 = vmatpush3.bf16.msra.mxu1 %v1214_v43 }
 0x1ba   : > { %1132 = vmatmul.mubr.msk.bf16.vlgmr.msra.gmra.mrb[4].mxu1 %vm586_vm2, %v649_v42 }
 0x285   : > { %v705_v48 = vpop.f32.mrb[0].mxu1 }
 0x286   : > { %v1125_v49 = vpop.f32.mrb[1].mxu1  ;;  %v706_v3 = vadd.f32 %v1083_v1, %v705_v48 }
 0x287   : > { %v708_v50 = vpop.f32.mrb[2].mxu1 }
 0x288   : > { %v1126_v51 = vpop.f32.mrb[3].mxu1  ;;  %v709_v6 = vadd.f32 %v1083_v1, %v708_v50 }
 0x28d   : > { %v764_v53 = vpop.f32.mrb[4].mxu1 }
 0x28e   : > { %v765_v54 = vadd.f32 %v1087_v52, %v764_v53  ;;  %v1133_v55 = vpop.f32.mrb[5].mxu1 }
 0x28f   : > { %v767_v56 = vpop.f32.mrb[6].mxu1 }
 0x290   : > { %v1091_v57 = vmul.f32 -1.442695, %v765_v54  ;;  %v768_v58 = vadd.f32 %v1087_v52, %v767_v56  ;;  %v1134_v59 = vpop.f32.mrb[7].mxu1 }
 0x292   : > { %1223 = vpow2.f32 %v1091_v57  ;;  %v1092_v60 = vmul.f32 -1.442695, %v768_v58 }
 0x294   : > { %1225 = vpow2.f32 %v1092_v60 }
 0x29c   : > { %v1224_v61 = vpop.eup %1223 }
 0x29d   : > { %v777_v62 = vadd.f32 1.0, %v1224_v61 }
 0x29e   : > { %v1226_v63 = vpop.eup %1225 }
 0x29f   : > { %1227 = vrcp.f32 %v777_v62  ;;  %v778_v0 = vadd.f32 1.0, %v1226_v63 }
 0x2a1   : > { %1229 = vrcp.f32 %v778_v0 }
 0x2a9   : > { %v1228_v2 = vpop.eup %1227 }
 0x2aa   : > { %v783_v4 = vmul.f32 %v1228_v2, %v765_v54 }
 0x2ab   : > { %v1230_v5 = vpop.eup %1229 }
 0x2ac   : > { %v785_v7 = vmul.f32 %v783_v4, %v706_v3  ;;  %v784_v8 = vmul.f32 %v1230_v5, %v768_v58 }
 0x2ae   : > { %v786_v9 = vmul.f32 %v784_v8, %v709_v6 }
 0x2b0   : > { %v787_v10 = vpack.c.bf16 %v786_v9, %v785_v7 }
 0x2b2   : > { %1144 = vmatmul.mubr.msk.bf16.vlgmr.msra.gmra.mrb[0].mxu0 %vm818_vm4, %v787_v10 }
 0x385   : > { %v856_v12 = vpop.f32.mrb[0].mxu0 }
 0x386   : > { %v857_v13 = vadd.f32 %v1093_v11, %v856_v12  ;;  %v1145_v14 = vpop.f32.mrb[1].mxu0 }
 0x387   : > { %v859_v15 = vpop.f32.mrb[2].mxu0 }
 0x388   : > { %863 = vst.msk [vmem:[%s1712_s9] sm:$0xff] %vm586_vm2, %v857_v13  ;;  %v860_v16 = vadd.f32 %v1093_v11, %v859_v15  ;;  %v1146_v17 = vpop.f32.mrb[3].mxu0 }
 0x38a   : > { %864 = vst.msk [vmem:[%s1712_s9 + $0x8] sm:$0xff] %vm586_vm2, %v860_v16 }
 0x38b PF: > { %s27_s18 = sadd.s32 1, %s1345_s18   ;;  %s1732_s15 = sld [smem:[#allocation8_spill]] }
 0x38c   : > { %p24_p8 = scmp.ge.s32.totalorder %s27_s18, 4   ;;  %s1733_s25 = sld [smem:[#allocation11_spill]] }
 0x38d   : > { %s1734_s16 = sld [smem:[#allocation9_spill]]  ;;  %s1735_s17 = sld [smem:[#allocation10_spill]] }
 0x38e   : > { %s1736_s13 = smov %s1329_s14  ;;  %26 = sbr.rel (!%p24_p8) target bundleno = 9 (0x9), region = 150 }
 0x391   : > { %s1737_s14 = smov %s1732_s15 }
 0x392   : > { %s1738_s15 = smov %s1733_s25 }
 0x395   :  { %904 = vsyncpa [#allocation3], 1 }
 0x396   :  { %906 = vsyncpa [#allocation3 + $0x1], 1 }
 0x397   :  { %907 = vsyncpa [#allocation5], 1 }
 0x398   :  { %909 = vsyncpa [#allocation5 + $0x1], 1 }

// kernel: mamba_pod_time_forward.3
= control target key start
LH: loop header
LB: loop body
LE: loop exit
PB: predicated region body
PF: predicated region fallthrough
CT: control target
= control target key end

     0   :  { %vm51_vm0 = vcmask 261120   ;;  %s657_s0 = inlined_call_operand.vmem [shape: f32[16,32], index: 0, kind: input, shape index: {}]   ;;  %s658_s1 = inlined_call_operand.vmem [shape: f32[16,32], index: 1, kind: input, shape index: {}]   ;;  %s659_s2 = inlined_call_operand.vmem [shape: f32[1,32], index: 2, kind: input, shape index: {}, may-alias: {2,4}]   ;;  %s660_s3 = inlined_call_operand.vmem [shape: f32[1,32], index: 3, kind: input, shape index: {}, may-alias: {3,5}]   ;;  %s661_s4 = inlined_call_operand.vmem [shape: f32[1,32], index: 4, kind: input, shape index: {}, may-alias: {2,4}]   ;;  %s662_s5 = inlined_call_operand.vmem [shape: f32[1,32], index: 5, kind: input, shape index: {}, may-alias: {3,5}]   ;;  %s663_s6 = inlined_call_operand.vmem [shape: bf16[32,64], index: 6, kind: input, shape index: {}]   ;;  %s664_s7 = inlined_call_operand.vmem [shape: f32[1,64], index: 7, kind: input, shape index: {}, may-alias: {7,9}]   ;;  %s665_s8 = inlined_call_operand.vmem [shape: bf16[32,64], index: 8, kind: input, shape index: {}]   ;;  %s666_s9 = inlined_call_operand.vmem [shape: f32[1,64], index: 9, kind: input, shape index: {}, may-alias: {7,9}]   ;;  %s667_s10 = inlined_call_operand.vmem [shape: bf16[64,16], index: 10, kind: input, shape index: {}]   ;;  %s668_s11 = inlined_call_operand.vmem [shape: f32[1,16], index: 11, kind: input, shape index: {}]   ;;  %s669_s12 = inlined_call_operand.hbm [shape: f32[16,16], index: 12, kind: output, shape index: {}]  }
   0x1   :  { %v43_v0 = vld [vmem:[%s658_s1] sm:$0xff]  ;;  %v44_v2 = vld [vmem:[%s658_s1 + $0x8] sm:$0xff] }
   0x2   :  { %v45_v1 = vld [vmem:[%s657_s0] sm:$0xff]  ;;  %v46_v4 = vld [vmem:[%s657_s0 + $0x8] sm:$0xff] }
   0x3   :  { %v47_v3 = vadd.f32 %v45_v1, %v43_v0  ;;  %v48_v5 = vadd.f32 %v46_v4, %v44_v2 }
   0x5   :  { %v52_v6 = vsel %vm51_vm0, %v47_v3, 0.0  ;;  %v55_v7 = vsel %vm51_vm0, %v48_v5, 0.0 }
   0x6   :  { %53 = vadd.xlane.f32.xlu0 %v52_v6 }
   0x7   :  { %17 = vsyncpa [#allocation3], 0  ;;  %v393_v25 = vld [vmem:[%s659_s2] ss:$0 sm:$0xff]  ;;  %v505_v49 = vmov 0.0   ;;  %v458_v50 = vld [vmem:[%s663_s6 + $0x8] sm:$0xff]  }
   0x8   :  { %v394_v27 = vld [vmem:[%s660_s3] ss:$0 sm:$0xff]  ;;  %424 = vmatprep.subr.bf16.mxu1 %v505_v49  ;;  %440 = vmatprep.subr.bf16.mxu0 %v505_v49  ;;  %vm506_vm1 = vmmov 0   ;;  %vm329_vm2 = vcmask 523264   ;;  %s507_s29 = smov [#allocation2]   ;;  %vm374_vm3 = vcmask 130048  }
   0x9   :  { %v457_v48 = vld [vmem:[%s663_s6] sm:$0xff]   ;;  %428 = vmatprep.mubr.msk.bf16.mxu1 %vm506_vm1, %v505_v49  ;;  %448 = vmatprep.mubr.msk.bf16.mxu0 %vm506_vm1, %v505_v49  ;;  %s382_s30 = sshll.u32 %s507_s29, 4  ;;  %s383_s30 = int_to_ptr.vmem [resolvable:$true] %s382_s30 }
   0xa   :  { %56 = vadd.xlane.f32.xlu0 %v55_v7  ;;  %425 = vmatpush3.bf16.msra.mxu1 %v457_v48  ;;  %v395_v59 = vld [vmem:[%s661_s4] ss:$0 sm:$0xff]  ;;  %v462_v7 = vld [vmem:[%s667_s10 + $0x8] sm:$0xff]   ;;  %p486_p1 = scmp.lt.s32.totalorder %s383_s30, %s383_s30 }
   0xb   :  { %426 = vmatprep.subr.bf16.mxu1 %v505_v49  ;;  %v396_v63 = vld [vmem:[%s662_s5] ss:$0 sm:$0xff] }
   0xc   :  { %v461_v6 = vld [vmem:[%s667_s10] sm:$0xff]  }
   0xd   :  { %441 = vmatpush3.bf16.msra.mxu0 %v461_v6 }
   0xe   :  { %427 = vmatpush3.bf16.msra.mxu1 %v458_v50  ;;  %442 = vmatprep.subr.bf16.mxu0 %v505_v49 }
   0xf   :  { %432 = vmatprep.subr.bf16.mxu1 %v505_v49 }
  0x11   :  { %443 = vmatpush3.bf16.msra.mxu0 %v462_v7 }
  0x12   :  { %444 = vmatprep.subr.bf16.mxu0 %v505_v49 }
  0x93   :  { %v54_v8 = vpop.xlane.xlu0 %53 }
  0x94   :  { %v59_v9 = vmul.f32 0.03125, %v54_v8  ;;  %v463_v8 = vld [vmem:[%s667_s10 + $0x10] sm:$0xff]  }
  0x95   :  { %445 = vmatpush3.bf16.msra.mxu0 %v463_v8 }
  0x96   :  { %v61_v10 = vsub.f32 %v47_v3, %v59_v9  ;;  %446 = vmatprep.subr.bf16.mxu0 %v505_v49  ;;  %v464_v9 = vld [vmem:[%s667_s10 + $0x18] sm:$0xff]  }
  0x97   :  { %v57_v11 = vpop.xlane.xlu0 %56 }
  0x98   :  { %v60_v12 = vmul.f32 0.03125, %v57_v11  ;;  %v63_v13 = vmul.f32 %v61_v10, %v61_v10 }
  0x99   :  { %447 = vmatpush3.bf16.msra.mxu0 %v464_v9 }
  0x9a   :  { %v62_v14 = vsub.f32 %v48_v5, %v60_v12  ;;  %v65_v15 = vsel %vm51_vm0, %v63_v13, 0.0 }
  0x9b   :  { %66 = vadd.xlane.f32.xlu1 %v65_v15 }
  0x9c   :  { %v64_v16 = vmul.f32 %v62_v14, %v62_v14 }
  0x9e   :  { %v68_v17 = vsel %vm51_vm0, %v64_v16, 0.0 }
  0x9f   :  { %69 = vadd.xlane.f32.xlu1 %v68_v17 }
 0x128   :  { %v67_v18 = vpop.xlane.xlu1 %66 }
 0x129   :  { %v71_v19 = vmul.f32 0.03125, %v67_v18 }
 0x12b   :  { %v73_v20 = vadd.f32 1e-05, %v71_v19 }
 0x12c   :  { %v70_v21 = vpop.xlane.xlu1 %69 }
 0x12d   :  { %465 = vrsqrt.f32 %v73_v20  ;;  %v72_v22 = vmul.f32 0.03125, %v70_v21 }
 0x12f   :  { %v74_v23 = vadd.f32 1e-05, %v72_v22 }
 0x131   :  { %467 = vrsqrt.f32 %v74_v23 }
 0x137   :  { %v466_v24 = vpop.eup %465 }
 0x138   :  { %v77_v26 = vmul.f32 %v466_v24, %v61_v10 }
 0x13a   :  { %v85_v28 = vmul.f32 %v393_v25, %v77_v26 }
 0x13b   :  { %v468_v29 = vpop.eup %467 }
 0x13c   :  { %v93_v30 = vadd.f32 %v394_v27, %v85_v28  ;;  %v78_v31 = vmul.f32 %v468_v29, %v62_v14  ;;  %v401_v14 = vld [vmem:[%s666_s9] ss:$0 sm:$0xff] }
 0x13e   :  { %v95_v32 = vadd.f32 %v93_v30, %v47_v3  ;;  %v86_v33 = vmul.f32 %v393_v25, %v78_v31  ;;  %v459_v3 = vld [vmem:[%s665_s8] sm:$0xff]  }
 0x140   :  { %v99_v34 = vsel %vm51_vm0, %v95_v32, 0.0  ;;  %v94_v35 = vadd.f32 %v394_v27, %v86_v33  ;;  %v397_v27 = vld [vmem:[%s664_s7] ss:$0 sm:$0xff]  ;;  %s481_s7 = scalar_lea.vmem %s383_s30, 256 }
 0x141   :  { %100 = vadd.xlane.f32.xlu0 %v99_v34  ;;  %p482_p0 = scmp.ne.s32.totalorder %s383_s30, %s481_s7  ;;  %p487_p2 = scmp.lt.s32.totalorder %s481_s7, %s481_s7 }
 0x142   :  { %v96_v36 = vadd.f32 %v94_v35, %v48_v5  ;;  %v460_v5 = vld [vmem:[%s665_s8 + $0x8] sm:$0xff]  }
 0x143   :  { %p488_p3 = por %p487_p2, %p486_p1 }
 0x144   :  { %v102_v37 = vsel %vm51_vm0, %v96_v36, 0.0 }
 0x145   :  { %103 = vadd.xlane.f32.xlu1 %v102_v37  ;;  %v407_v37 = vld [vmem:[%s668_s11] ss:$0 sm:$0xff]  ;;  %p489_p4 = pnand %p488_p3, %p482_p0 }
 0x1ce   :  { %v101_v38 = vpop.xlane.xlu0 %100 }
 0x1cf   :  { %v105_v39 = vmul.f32 0.03125, %v101_v38 }
 0x1d1   :  { %v107_v40 = vsub.f32 %v95_v32, %v105_v39 }
 0x1d2   :  { %v104_v41 = vpop.xlane.xlu1 %103 }
 0x1d3   :  { %v106_v42 = vmul.f32 0.03125, %v104_v41  ;;  %v109_v43 = vmul.f32 %v107_v40, %v107_v40 }
 0x1d5   :  { %v108_v44 = vsub.f32 %v96_v36, %v106_v42  ;;  %v111_v45 = vsel %vm51_vm0, %v109_v43, 0.0 }
 0x1d6   :  { %112 = vadd.xlane.f32.xlu0 %v111_v45 }
 0x1d7   :  { %v110_v46 = vmul.f32 %v108_v44, %v108_v44 }
 0x1d9   :  { %v114_v47 = vsel %vm51_vm0, %v110_v46, 0.0 }
 0x1da   :  { %115 = vadd.xlane.f32.xlu1 %v114_v47 }
 0x263   :  { %v113_v51 = vpop.xlane.xlu0 %112 }
 0x264   :  { %v117_v52 = vmul.f32 0.03125, %v113_v51 }
 0x266   :  { %v119_v53 = vadd.f32 1e-05, %v117_v52 }
 0x267   :  { %v116_v54 = vpop.xlane.xlu1 %115 }
 0x268   :  { %469 = vrsqrt.f32 %v119_v53  ;;  %v118_v55 = vmul.f32 0.03125, %v116_v54 }
 0x26a   :  { %v120_v56 = vadd.f32 1e-05, %v118_v55 }
 0x26c   :  { %471 = vrsqrt.f32 %v120_v56 }
 0x272   :  { %v470_v57 = vpop.eup %469 }
 0x273   :  { %v123_v58 = vmul.f32 %v470_v57, %v107_v40 }
 0x275   :  { %v131_v62 = vmul.f32 %v395_v59, %v123_v58 }
 0x276   :  { %v472_v60 = vpop.eup %471 }
 0x277   :  { %v124_v61 = vmul.f32 %v472_v60, %v108_v44  ;;  %v139_v1 = vadd.f32 %v396_v63, %v131_v62 }
 0x279   :  { %v132_v0 = vmul.f32 %v395_v59, %v124_v61 }
 0x27b   :  { %v140_v2 = vadd.f32 %v396_v63, %v132_v0 }
 0x27d   :  { %v160_v4 = vpack.c.bf16 %v140_v2, %v139_v1 }
 0x27f   :  { %429 = vmatmul.mubr.msk.bf16.vlgmr.msra.gmra.mrb[0].mxu1 %vm51_vm0, %v160_v4 }
 0x280   :  { %433 = vmatpush3.bf16.msra.mxu1 %v459_v3  ;;  %436 = vmatprep.mubr.msk.bf16.mxu1 %vm506_vm1, %v505_v49 }
 0x281   :  { %434 = vmatprep.subr.bf16.mxu1 %v505_v49 }
 0x284   :  { %435 = vmatpush3.bf16.msra.mxu1 %v460_v5 }
 0x287   :  { %437 = vmatmul.mubr.msk.bf16.vlgmr.msra.gmra.mrb[4].mxu1 %vm51_vm0, %v160_v4 }
 0x352   :  { %v216_v10 = vpop.f32.mrb[0].mxu1 }
 0x353   :  { %v430_v11 = vpop.f32.mrb[1].mxu1  ;;  %v217_v29 = vadd.f32 %v397_v27, %v216_v10 }
 0x354   :  { %v219_v12 = vpop.f32.mrb[2].mxu1 }
 0x355   :  { %v431_v13 = vpop.f32.mrb[3].mxu1  ;;  %v220_v32 = vadd.f32 %v397_v27, %v219_v12 }
 0x35a   :  { %v275_v15 = vpop.f32.mrb[4].mxu1 }
 0x35b   :  { %v276_v16 = vadd.f32 %v401_v14, %v275_v15  ;;  %v438_v17 = vpop.f32.mrb[5].mxu1 }
 0x35c   :  { %v278_v18 = vpop.f32.mrb[6].mxu1 }
 0x35d   :  { %v405_v19 = vmul.f32 -1.442695, %v276_v16  ;;  %v279_v20 = vadd.f32 %v401_v14, %v278_v18  ;;  %v439_v21 = vpop.f32.mrb[7].mxu1 }
 0x35f   :  { %473 = vpow2.f32 %v405_v19  ;;  %v406_v22 = vmul.f32 -1.442695, %v279_v20 }
 0x361   :  { %475 = vpow2.f32 %v406_v22 }
 0x369   :  { %v474_v23 = vpop.eup %473 }
 0x36a   :  { %v288_v24 = vadd.f32 1.0, %v474_v23 }
 0x36b   :  { %v476_v25 = vpop.eup %475 }
 0x36c   :  { %477 = vrcp.f32 %v288_v24  ;;  %v289_v26 = vadd.f32 1.0, %v476_v25 }
 0x36e   :  { %479 = vrcp.f32 %v289_v26 }
 0x376   :  { %v478_v28 = vpop.eup %477 }
 0x377   :  { %v294_v30 = vmul.f32 %v478_v28, %v276_v16 }
 0x378   :  { %v480_v31 = vpop.eup %479 }
 0x379   :  { %v296_v33 = vmul.f32 %v294_v30, %v217_v29  ;;  %v295_v34 = vmul.f32 %v480_v31, %v279_v20 }
 0x37b   :  { %v297_v35 = vmul.f32 %v295_v34, %v220_v32 }
 0x37d   :  { %v298_v36 = vpack.c.bf16 %v297_v35, %v296_v33 }
 0x37f   :  { %449 = vmatmul.mubr.msk.bf16.vlgmr.msra.gmra.mrb[0].mxu0 %vm329_vm2, %v298_v36 }
 0x452   :  { %v367_v38 = vpop.f32.mrb[0].mxu0 }
 0x453   :  { %v368_v39 = vadd.f32 %v407_v37, %v367_v38  ;;  %v450_v40 = vpop.f32.mrb[1].mxu0 }
 0x454   :  { %v370_v41 = vpop.f32.mrb[2].mxu0 }
 0x455   :  { %375 = vst.msk [vmem:[#allocation2] sm:$0xff] %vm374_vm3, %v368_v39  ;;  %v371_v42 = vadd.f32 %v407_v37, %v370_v41  ;;  %v451_v43 = vpop.f32.mrb[3].mxu0 }
 0x457   :  { %376 = vst.msk [vmem:[#allocation2 + $0x8] sm:$0xff] %vm374_vm3, %v371_v42 }
 0x458   :  { %492 = shalt.err (!%p489_p4)
}
 0x459   :  { %s493_s3 = scalar_lea.hbm %s669_s12, 256 }
 0x45a   :  { %p494_p5 = scmp.ne.s32.totalorder %s669_s12, %s493_s3  ;;  %p497_p6 = scmp.lt.u32.totalorder %s493_s3, %s669_s12 }
 0x45c   :  { %p499_p7 = pnand %p497_p6, %p494_p5 }
 0x45e   :  { %502 = shalt.err (!%p499_p7)
}
 0x45f   :  { %s508_s16 = smov 128   ;;  %s509_s17 = smov 8  }
 0x460   :  { %388 = dma.vmem_to_hbm [thread:$0]  %s383_s30, 256, %s669_s12, [#allocation3], %s508_s16, %s508_s16, %s509_s17  }
 0x461   :  { %503 = dma.done.wait [#allocation3], 256  }
 0x462   :  { %504 = vsyncadd [#allocation3], 4294967040 }
 0x463   :  { %392 = vsyncpa [#allocation3], 1 }

</bundles_post_ra>
